<compile_context>
chip_gen: v7x
topology: tpu7x:2x2x1
jax: 0.10.0
libtpu: 0.0.40
codegen_flags: <defaults>
</compile_context>

<pallas_src>
import jax
import jax.numpy as jnp
from jax.experimental import pallas as pl
from jax.experimental.pallas import tpu as pltpu


def _round_up(x: int, m: int) -> int:
    return ((x + m - 1) // m) * m


def _gemm_bias_relu_kernel(a_ref, b_ref, bias_ref, o_ref, acc_ref):
    """One (TM, TN) output tile of relu(A @ B + bias).

    a_ref:    (TM, TK) im2col patch tile
    b_ref:    (TK, TN) folded conv-weight tile
    bias_ref: (1,  TN) conv bias tile
    o_ref:    (TM, TN) output tile
    acc_ref:  (TM, TN) f32 VMEM scratch accumulator (lives across the K axis)
    """
    k = pl.program_id(2)

    @pl.when(k == 0)
    def _():
        acc_ref[...] = jnp.zeros_like(acc_ref)

    acc_ref[...] += jnp.dot(a_ref[...], b_ref[...],
                            preferred_element_type=jnp.float32)

    @pl.when(k == pl.num_programs(2) - 1)
    def _():
        out = acc_ref[...] + bias_ref[...].astype(jnp.float32)
        o_ref[...] = jnp.maximum(out, 0.0).astype(o_ref.dtype)


def conv_module_forward(x_nchw, weight_oihw, bias, *, padding=1):
    """ConvModule.forward(x) for stride=1, dilation=1, groups=1 (default cfg:
    conv + bias + ReLU, no norm)."""
    N, Cin, Hin, Win = x_nchw.shape
    Cout, _, KH, KW = weight_oihw.shape
    H = Hin + 2 * padding - KH + 1
    W = Win + 2 * padding - KW + 1

    # --- im2col (wrapper side): fold the taps into the contraction dim -------
    x_nhwc = jnp.transpose(x_nchw, (0, 2, 3, 1))
    x_pad = jnp.pad(
        x_nhwc, ((0, 0), (padding, padding), (padding, padding), (0, 0)))
    cols = [x_pad[:, kh:kh + H, kw:kw + W, :]
            for kh in range(KH) for kw in range(KW)]
    Kdim = KH * KW * Cin
    M = N * H * W
    patches = jnp.concatenate(cols, axis=-1).reshape(M, Kdim)      # (M, K)
    # OIHW -> (KH, KW, Cin, Cout) -> (K, Cout); ordering matches `cols`.
    w2d = jnp.transpose(weight_oihw, (2, 3, 1, 0)).reshape(Kdim, Cout)
    b2d = bias.reshape(1, Cout).astype(jnp.float32)

    # --- tile sizes (lane-dense, v7x-safe VMEM budget) -----------------------
    TM = min(512, _round_up(M, 128))
    TN = 128
    TK = min(512, _round_up(Kdim, 128))
    Mp = _round_up(M, TM)
    Kp = _round_up(Kdim, TK)
    Cp = _round_up(Cout, TN)

    patches = jnp.pad(patches, ((0, Mp - M), (0, Kp - Kdim)))
    w2d = jnp.pad(w2d, ((0, Kp - Kdim), (0, Cp - Cout)))
    b2d = jnp.pad(b2d, ((0, 0), (0, Cp - Cout)))

    grid = (Mp // TM, Cp // TN, Kp // TK)

    cost = pl.CostEstimate(
        flops=2 * N * H * W * KH * KW * Cin * Cout,
        transcendentals=0,
        bytes_accessed=(x_nchw.size + weight_oihw.size + bias.size
                        + N * H * W * Cout) * 4,
    )

    out_flat = pl.pallas_call(
        _gemm_bias_relu_kernel,
        out_shape=jax.ShapeDtypeStruct((Mp, Cp), x_nchw.dtype),
        grid_spec=pltpu.PrefetchScalarGridSpec(
            num_scalar_prefetch=0,
            grid=grid,
            in_specs=[
                pl.BlockSpec((TM, TK), lambda m, n, k: (m, k)),
                pl.BlockSpec((TK, TN), lambda m, n, k: (k, n)),
                pl.BlockSpec((1, TN), lambda m, n, k: (0, n)),
            ],
            out_specs=pl.BlockSpec((TM, TN), lambda m, n, k: (m, n)),
            scratch_shapes=[pltpu.VMEM((TM, TN), jnp.float32)],
        ),
        compiler_params=pltpu.CompilerParams(
            dimension_semantics=("parallel", "parallel", "arbitrary"),
            vmem_limit_bytes=32 * 1024 * 1024,
        ),
        cost_estimate=cost,
    )(patches, w2d, b2d)

    out = out_flat[:M, :Cout].reshape(N, H, W, Cout)
    return jnp.transpose(out, (0, 3, 1, 2))  # back to NCHW


# TODO(synk): norm branch (norm_cfg is not None), swish activation, and a bf16
# operand path (for v6e/v7x MXU rate) are not instantiated; the default
# ConvModule config is conv + bias + relu in f32.

if __name__ == "__main__":
    key = jax.random.PRNGKey(0)
    k_x, k_w, k_b = jax.random.split(key, 3)

    N, Cin, Hs, Cout, K, pad = 2, 4, 16, 8, 3, 1

    x = jax.random.normal(k_x, (N, Cin, Hs, Hs), dtype=jnp.float32)
    # Deterministic kaiming-style init (fan_in = Cin*K*K, relu gain sqrt(2)).
    fan_in = Cin * K * K
    weight = jax.random.normal(k_w, (Cout, Cin, K, K),
                               dtype=jnp.float32) * jnp.sqrt(2.0 / fan_in)
    bias = 0.1 * jax.random.normal(k_b, (Cout,), dtype=jnp.float32)

    out = conv_module_forward(x, weight, bias, padding=pad)
    out = jax.block_until_ready(out)

    # Reference check against XLA conv (same semantics as nn.Conv2d + ReLU).
    ref = jax.lax.conv_general_dilated(
        x, weight, window_strides=(1, 1), padding=((pad, pad), (pad, pad)),
        dimension_numbers=("NCHW", "OIHW", "NCHW"))
    ref = jnp.maximum(ref + bias[None, :, None, None], 0.0)

    assert out.shape == (N, Cout, Hs, Hs)
    assert jnp.allclose(out, ref, atol=1e-4, rtol=1e-4), \
        float(jnp.max(jnp.abs(out - ref)))
    print("KERNEL_OK")
</pallas_src>

<mosaic_0001>
module attributes {stable_mosaic.version = 11 : i64} {
  func.func @_gemm_bias_relu_kernel(%arg0: i32, %arg1: i32, %arg2: i32, %arg3: memref<512x128xf32, #tpu.memory_space<vmem>>, %arg4: memref<128x128xf32, #tpu.memory_space<vmem>>, %arg5: memref<1x128xf32, #tpu.memory_space<vmem>>, %arg6: memref<512x128xf32, #tpu.memory_space<vmem>>, %arg7: memref<512x128xf32, #tpu.memory_space<vmem>>) attributes {dimension_semantics = [#tpu.dimension_semantics<parallel>, #tpu.dimension_semantics<parallel>, #tpu.dimension_semantics<arbitrary>], iteration_bounds = array<i64: 1, 1, 1>, scalar_prefetch = 0 : i64, scratch_operands = 1 : i64, tpu.core_type = #tpu.core_type<tc>, window_params = [{transform_indices = @transform_0, window_bounds = array<i64: 512, 128>}, {transform_indices = @transform_1, window_bounds = array<i64: 128, 128>}, {transform_indices = @transform_2, window_bounds = array<i64: 1, 128>}, {transform_indices = @transform_3, window_bounds = array<i64: 512, 128>}]} {
    %c0_i32 = arith.constant 0 : i32
    %0 = arith.cmpi eq, %arg2, %c0_i32 : i32
    %1 = arith.extui %0 : i1 to i32
    %c0_i32_0 = arith.constant 0 : i32
    %2 = arith.cmpi ne, %1, %c0_i32_0 : i32
    scf.if %2 {
      %cst_10 = arith.constant 0.000000e+00 : f32
      %12 = vector.broadcast %cst_10 : f32 to vector<512x128xf32>
      %c0_11 = arith.constant 0 : index
      %c0_12 = arith.constant 0 : index
      %13 = vector.load %arg7[%c0_11, %c0_12] : memref<512x128xf32, #tpu.memory_space<vmem>>, vector<512x128xf32>
      tpu.vector_store %arg7[%c0_11, %c0_12], %12 {strides = array<i32>} : memref<512x128xf32, #tpu.memory_space<vmem>>, vector<512x128xf32>,
    } else {
    }
    %c0 = arith.constant 0 : index
    %c0_1 = arith.constant 0 : index
    %3 = vector.load %arg7[%c0, %c0_1] : memref<512x128xf32, #tpu.memory_space<vmem>>, vector<512x128xf32>
    %c0_2 = arith.constant 0 : index
    %c0_3 = arith.constant 0 : index
    %4 = vector.load %arg3[%c0_2, %c0_3] : memref<512x128xf32, #tpu.memory_space<vmem>>, vector<512x128xf32>
    %c0_4 = arith.constant 0 : index
    %c0_5 = arith.constant 0 : index
    %5 = vector.load %arg4[%c0_4, %c0_5] : memref<128x128xf32, #tpu.memory_space<vmem>>, vector<128x128xf32>
    %cst = arith.constant dense<0.000000e+00> : vector<512x128xf32>
    %6 = tpu.matmul %4, %5, %cst {dimension_numbers = #tpu.dot_dimension_numbers<[1], [0], [0], [1], [0, 0, 1, 1], [], []>} : vector<512x128xf32>, vector<128x128xf32>, vector<512x128xf32> -> vector<512x128xf32>
    %7 = arith.addf %3, %6 : vector<512x128xf32>
    %c0_6 = arith.constant 0 : index
    %c0_7 = arith.constant 0 : index
    %8 = vector.load %arg7[%c0_6, %c0_7] : memref<512x128xf32, #tpu.memory_space<vmem>>, vector<512x128xf32>
    tpu.vector_store %arg7[%c0_6, %c0_7], %7 {strides = array<i32>} : memref<512x128xf32, #tpu.memory_space<vmem>>, vector<512x128xf32>,
    %c0_i32_8 = arith.constant 0 : i32
    %9 = arith.cmpi eq, %arg2, %c0_i32_8 : i32
    %10 = arith.extui %9 : i1 to i32
    %c0_i32_9 = arith.constant 0 : i32
    %11 = arith.cmpi ne, %10, %c0_i32_9 : i32
    scf.if %11 {
      %c0_10 = arith.constant 0 : index
      %c0_11 = arith.constant 0 : index
      %12 = vector.load %arg7[%c0_10, %c0_11] : memref<512x128xf32, #tpu.memory_space<vmem>>, vector<512x128xf32>
      %c0_12 = arith.constant 0 : index
      %c0_13 = arith.constant 0 : index
      %13 = vector.load %arg5[%c0_12, %c0_13] : memref<1x128xf32, #tpu.memory_space<vmem>>, vector<1x128xf32>
      %14 = vector.broadcast %13 : vector<1x128xf32> to vector<512x128xf32>
      %15 = arith.addf %12, %14 : vector<512x128xf32>
      %cst_14 = arith.constant 0.000000e+00 : f32
      %16 = vector.broadcast %cst_14 : f32 to vector<512x128xf32>
      %17 = arith.maximumf %15, %16 : vector<512x128xf32>
      %c0_15 = arith.constant 0 : index
      %c0_16 = arith.constant 0 : index
      %18 = vector.load %arg6[%c0_15, %c0_16] : memref<512x128xf32, #tpu.memory_space<vmem>>, vector<512x128xf32>
      tpu.vector_store %arg6[%c0_15, %c0_16], %17 {strides = array<i32>} : memref<512x128xf32, #tpu.memory_space<vmem>>, vector<512x128xf32>,
    } else {
    }
    return
  }
  func.func @transform_0(%arg0: i32, %arg1: i32, %arg2: i32) -> (i32, i32) {
    %c0_i32 = arith.constant 0 : i32
    return %arg0, %arg2 : i32, i32
  }
  func.func @transform_1(%arg0: i32, %arg1: i32, %arg2: i32) -> (i32, i32) {
    %c0_i32 = arith.constant 0 : i32
    return %arg2, %arg1 : i32, i32
  }
  func.func @transform_2(%arg0: i32, %arg1: i32, %arg2: i32) -> (i32, i32) {
    %c0_i32 = arith.constant 0 : i32
    %c0_i32_0 = arith.constant 0 : i32
    return %c0_i32, %arg1 : i32, i32
  }
  func.func @transform_3(%arg0: i32, %arg1: i32, %arg2: i32) -> (i32, i32) {
    %c0_i32 = arith.constant 0 : i32
    return %arg0, %arg1 : i32, i32
  }
}

</mosaic_0001>

<bundles_post_ra>
// kernel: tpu_custom_call.1
= control target key start
LH: loop header
LB: loop body
LE: loop exit
PB: predicated region body
PF: predicated region fallthrough
CT: control target
= control target key end

     0   :  { %8 = vsyncpa [#allocation4], 0  ;;  %s1525_s0 = inlined_call_operand.hbm [shape: f32[512,128], index: 0, kind: input, shape index: {}]   ;;  %s1526_s1 = inlined_call_operand.hbm [shape: f32[128,128], index: 1, kind: input, shape index: {}]   ;;  %s1527_s2 = inlined_call_operand.vmem [shape: f32[1,128], index: 2, kind: input, shape index: {}]   ;;  %s1528_s3 = inlined_call_operand.hbm [shape: f32[512,128], index: 3, kind: output, shape index: {}]  }
   0x1   :  { %9 = vsyncpa [#allocation7], 0 }
   0x2   :  { %10 = vsyncpa [#allocation5], 0  ;;  %s1386_s12 = smov [#allocation3]   ;;  %s1314_s16 = scalar_lea.hbm %s1525_s0, 8192 }
   0x3   :  { %s16_s13 = sshll.u32 %s1386_s12, 4  ;;  %p1315_p0 = scmp.ne.s32.totalorder %s1525_s0, %s1314_s16  ;;  %s17_s13 = int_to_ptr.vmem [resolvable:$true] %s16_s13 }
   0x4   :  { %p1318_p1 = scmp.lt.u32.totalorder %s1314_s16, %s1525_s0 }
   0x6   :  { %p1320_p2 = pnand %p1318_p1, %p1315_p0 }
   0x8   :  { %1323 = shalt.err (!%p1320_p2)
}
   0x9   :  { %s1324_s21 = scalar_lea.vmem %s17_s13, 8192  ;;  %p1329_p4 = scmp.lt.s32.totalorder %s17_s13, %s17_s13 }
   0xa   :  { %p1325_p3 = scmp.ne.s32.totalorder %s17_s13, %s1324_s21  ;;  %p1330_p5 = scmp.lt.s32.totalorder %s1324_s21, %s1324_s21 }
   0xc   :  { %p1331_p6 = por %p1330_p5, %p1329_p4 }
   0xe   :  { %p1332_p7 = pnand %p1331_p6, %p1325_p3 }
  0x10   :  { %1335 = shalt.err (!%p1332_p7)
}
  0x11   :  { %s1387_s22 = smov 128   ;;  %s1388_s23 = smov 8  }
  0x12   :  { %22 = dma.hbm_to_vmem [thread:$0]  %s1525_s0, 8192, %s17_s13, [#allocation4], %s1387_s22, %s1387_s22, %s1388_s23  }
  0x13   :  { %s1389_s26 = smov [#allocation6]   ;;  %s1336_s30 = scalar_lea.hbm %s1526_s1, 2048 }
  0x14   :  { %s28_s27 = sshll.u32 %s1389_s26, 4  ;;  %p1337_p8 = scmp.ne.s32.totalorder %s1526_s1, %s1336_s30  ;;  %s29_s27 = int_to_ptr.vmem [resolvable:$true] %s28_s27 }
  0x15   :  { %p1340_p9 = scmp.lt.u32.totalorder %s1336_s30, %s1526_s1 }
  0x17   :  { %p1342_p10 = pnand %p1340_p9, %p1337_p8 }
  0x19   :  { %1345 = shalt.err (!%p1342_p10)
}
  0x1a   :  { %s1346_s8 = scalar_lea.vmem %s29_s27, 2048  ;;  %p1351_p12 = scmp.lt.s32.totalorder %s29_s27, %s29_s27 }
  0x1b   :  { %p1347_p11 = scmp.ne.s32.totalorder %s29_s27, %s1346_s8  ;;  %p1352_p13 = scmp.lt.s32.totalorder %s1346_s8, %s1346_s8 }
  0x1d   :  { %p1353_p0 = por %p1352_p13, %p1351_p12 }
  0x1f   :  { %p1354_p1 = pnand %p1353_p0, %p1347_p11 }
  0x21   :  { %1357 = shalt.err (!%p1354_p1)
}
  0x22   :  { %34 = dma.hbm_to_vmem [thread:$0]  %s1526_s1, 2048, %s29_s27, [#allocation7], %s1387_s22, %s1387_s22, %s1388_s23  }
  0x23   :  { %1380 = dma.done.wait [#allocation4], 8192  }
  0x24   :  { %1381 = vsyncadd [#allocation4], 4294959104 }
  0x25   :  { %1382 = dma.done.wait [#allocation7], 2048  }
  0x26   :  { %1383 = vsyncadd [#allocation7], 4294965248  ;;  %v239_v0 = vld [vmem:[#allocation6] sm:$0xff]  ;;  %v240_v1 = vld [vmem:[#allocation6 + $0x8] sm:$0xff] }
  0x27   :  { %v241_v2 = vld [vmem:[#allocation6 + $0x10] sm:$0xff]  ;;  %v1261_v3 = vpack.c.bf16 %v240_v1, %v239_v0  ;;  %v242_v4 = vld [vmem:[#allocation6 + $0x18] sm:$0xff]  ;;  %v243_v6 = vld [vmem:[#allocation6 + $0x20] sm:$0xff] }
  0x28   :  { %v1265_v5 = vpack.c.bf16 %v242_v4, %v241_v2  ;;  %v244_v7 = vld [vmem:[#allocation6 + $0x28] sm:$0xff]  ;;  %v175_v9 = vld [vmem:[#allocation3] sm:$0xff]  ;;  %v245_v11 = vld [vmem:[#allocation6 + $0x30] sm:$0xff] }
  0x29   :  { %1262 = vmatprep.subr.bf16.mxu0 %v1261_v3  ;;  %1293 = vmatprep.subr.bf16.mxu1 %v1261_v3  ;;  %v1269_v8 = vpack.c.bf16 %v244_v7, %v243_v6  ;;  %v207_v10 = vld [vmem:[#allocation3 + $0x100] sm:$0xff]  ;;  %v246_v12 = vld [vmem:[#allocation6 + $0x38] sm:$0xff]  ;;  %v248_v15 = vld [vmem:[#allocation6 + $0x48] sm:$0xff] }
  0x2a   :  { %1264 = vmatpush3.bf16.msra.mxu0 %v1261_v3  ;;  %1301 = vmatpush3.bf16.msra.mxu1 %v1261_v3  ;;  %v1273_v13 = vpack.c.bf16 %v246_v12, %v245_v11  ;;  %v247_v14 = vld [vmem:[#allocation6 + $0x40] sm:$0xff]  ;;  %v249_v17 = vld [vmem:[#allocation6 + $0x50] sm:$0xff]  ;;  %v250_v18 = vld [vmem:[#allocation6 + $0x58] sm:$0xff] }
  0x2b   :  { %1266 = vmatprep.subr.bf16.mxu0 %v1265_v5  ;;  %1294 = vmatprep.subr.bf16.mxu1 %v1265_v5  ;;  %v1277_v16 = vpack.c.bf16 %v248_v15, %v247_v14  ;;  %v1281_v19 = vpack.c.bf16 %v250_v18, %v249_v17  ;;  %v251_v20 = vld [vmem:[#allocation6 + $0x60] sm:$0xff]  ;;  %v252_v21 = vld [vmem:[#allocation6 + $0x68] sm:$0xff]  ;;  %v253_v23 = vld [vmem:[#allocation6 + $0x70] sm:$0xff] }
  0x2c   :  { %1165 = vmatprep.mubr.f32.mxu0 %v175_v9  ;;  %1213 = vmatprep.mubr.f32.mxu1 %v207_v10  ;;  %v1285_v22 = vpack.c.bf16 %v252_v21, %v251_v20  ;;  %v254_v24 = vld [vmem:[#allocation6 + $0x78] sm:$0xff]  ;;  %v176_v26 = vld [vmem:[#allocation3 + $0x8] sm:$0xff]  ;;  %v177_v28 = vld [vmem:[#allocation3 + $0x10] sm:$0xff] }
  0x2d   :  { %v1289_v25 = vpack.c.bf16 %v254_v24, %v253_v23  ;;  %v208_v27 = vld [vmem:[#allocation3 + $0x108] sm:$0xff]  ;;  %v209_v29 = vld [vmem:[#allocation3 + $0x110] sm:$0xff]  ;;  %v178_v30 = vld [vmem:[#allocation3 + $0x18] sm:$0xff] }
  0x2e   :  { %1268 = vmatpush3.bf16.msra.mxu0 %v1265_v5  ;;  %1302 = vmatpush3.bf16.msra.mxu1 %v1265_v5  ;;  %v210_v31 = vld [vmem:[#allocation3 + $0x118] sm:$0xff]  ;;  %v179_v32 = vld [vmem:[#allocation3 + $0x20] sm:$0xff]  ;;  %v180_v34 = vld [vmem:[#allocation3 + $0x28] sm:$0xff] }
  0x2f   :  { %1270 = vmatprep.subr.bf16.mxu0 %v1269_v8  ;;  %1295 = vmatprep.subr.bf16.mxu1 %v1269_v8  ;;  %v211_v33 = vld [vmem:[#allocation3 + $0x120] sm:$0xff]  ;;  %v212_v35 = vld [vmem:[#allocation3 + $0x128] sm:$0xff]  ;;  %v181_v36 = vld [vmem:[#allocation3 + $0x30] sm:$0xff] }
  0x30   :  { %v213_v37 = vld [vmem:[#allocation3 + $0x130] sm:$0xff]  ;;  %v182_v38 = vld [vmem:[#allocation3 + $0x38] sm:$0xff]  ;;  %v183_v40 = vld [vmem:[#allocation3 + $0x40] sm:$0xff] }
  0x31   :  { %v214_v39 = vld [vmem:[#allocation3 + $0x138] sm:$0xff]  ;;  %v215_v41 = vld [vmem:[#allocation3 + $0x140] sm:$0xff]  ;;  %v184_v42 = vld [vmem:[#allocation3 + $0x48] sm:$0xff] }
  0x32   :  { %1272 = vmatpush3.bf16.msra.mxu0 %v1269_v8  ;;  %1303 = vmatpush3.bf16.msra.mxu1 %v1269_v8  ;;  %v216_v43 = vld [vmem:[#allocation3 + $0x148] sm:$0xff]  ;;  %v185_v44 = vld [vmem:[#allocation3 + $0x50] sm:$0xff]  ;;  %v186_v46 = vld [vmem:[#allocation3 + $0x58] sm:$0xff] }
  0x33   :  { %1274 = vmatprep.subr.bf16.mxu0 %v1273_v13  ;;  %1296 = vmatprep.subr.bf16.mxu1 %v1273_v13  ;;  %v217_v45 = vld [vmem:[#allocation3 + $0x150] sm:$0xff]  ;;  %v218_v47 = vld [vmem:[#allocation3 + $0x158] sm:$0xff]  ;;  %v187_v48 = vld [vmem:[#allocation3 + $0x60] sm:$0xff] }
  0x34   :  { %v219_v49 = vld [vmem:[#allocation3 + $0x160] sm:$0xff]  ;;  %v188_v50 = vld [vmem:[#allocation3 + $0x68] sm:$0xff]  ;;  %v189_v52 = vld [vmem:[#allocation3 + $0x70] sm:$0xff] }
  0x35   :  { %v220_v51 = vld [vmem:[#allocation3 + $0x168] sm:$0xff]  ;;  %v221_v53 = vld [vmem:[#allocation3 + $0x170] sm:$0xff]  ;;  %v190_v54 = vld [vmem:[#allocation3 + $0x78] sm:$0xff] }
  0x36   :  { %1276 = vmatpush3.bf16.msra.mxu0 %v1273_v13  ;;  %1304 = vmatpush3.bf16.msra.mxu1 %v1273_v13  ;;  %v222_v55 = vld [vmem:[#allocation3 + $0x178] sm:$0xff]  ;;  %v191_v56 = vld [vmem:[#allocation3 + $0x80] sm:$0xff]  ;;  %v192_v58 = vld [vmem:[#allocation3 + $0x88] sm:$0xff] }
  0x37   :  { %1278 = vmatprep.subr.bf16.mxu0 %v1277_v16  ;;  %1297 = vmatprep.subr.bf16.mxu1 %v1277_v16  ;;  %v223_v57 = vld [vmem:[#allocation3 + $0x180] sm:$0xff]  ;;  %v224_v59 = vld [vmem:[#allocation3 + $0x188] sm:$0xff]  ;;  %v193_v60 = vld [vmem:[#allocation3 + $0x90] sm:$0xff] }
  0x38   :  { %v225_v61 = vld [vmem:[#allocation3 + $0x190] sm:$0xff]  ;;  %v194_v62 = vld [vmem:[#allocation3 + $0x98] sm:$0xff]  ;;  %v195_v0 = vld [vmem:[#allocation3 + $0xa0] sm:$0xff] }
  0x39   :  { %v226_v63 = vld [vmem:[#allocation3 + $0x198] sm:$0xff]  ;;  %v227_v1 = vld [vmem:[#allocation3 + $0x1a0] sm:$0xff]  ;;  %v196_v2 = vld [vmem:[#allocation3 + $0xa8] sm:$0xff] }
  0x3a   :  { %1280 = vmatpush3.bf16.msra.mxu0 %v1277_v16  ;;  %1305 = vmatpush3.bf16.msra.mxu1 %v1277_v16  ;;  %v228_v3 = vld [vmem:[#allocation3 + $0x1a8] sm:$0xff]  ;;  %v197_v4 = vld [vmem:[#allocation3 + $0xb0] sm:$0xff]  ;;  %v198_v6 = vld [vmem:[#allocation3 + $0xb8] sm:$0xff] }
  0x3b   :  { %1282 = vmatprep.subr.bf16.mxu0 %v1281_v19  ;;  %1298 = vmatprep.subr.bf16.mxu1 %v1281_v19  ;;  %v229_v5 = vld [vmem:[#allocation3 + $0x1b0] sm:$0xff]  ;;  %v230_v7 = vld [vmem:[#allocation3 + $0x1b8] sm:$0xff]  ;;  %v199_v8 = vld [vmem:[#allocation3 + $0xc0] sm:$0xff] }
  0x3c   :  { %v231_v9 = vld [vmem:[#allocation3 + $0x1c0] sm:$0xff]  ;;  %v200_v10 = vld [vmem:[#allocation3 + $0xc8] sm:$0xff]  ;;  %v201_v12 = vld [vmem:[#allocation3 + $0xd0] sm:$0xff] }
  0x3d   :  { %v232_v11 = vld [vmem:[#allocation3 + $0x1c8] sm:$0xff]  ;;  %v233_v13 = vld [vmem:[#allocation3 + $0x1d0] sm:$0xff]  ;;  %v202_v14 = vld [vmem:[#allocation3 + $0xd8] sm:$0xff] }
  0x3e   :  { %1284 = vmatpush3.bf16.msra.mxu0 %v1281_v19  ;;  %1306 = vmatpush3.bf16.msra.mxu1 %v1281_v19  ;;  %v234_v15 = vld [vmem:[#allocation3 + $0x1d8] sm:$0xff]  ;;  %v203_v16 = vld [vmem:[#allocation3 + $0xe0] sm:$0xff]  ;;  %v204_v18 = vld [vmem:[#allocation3 + $0xe8] sm:$0xff] }
  0x3f   :  { %1286 = vmatprep.subr.bf16.mxu0 %v1285_v22  ;;  %1299 = vmatprep.subr.bf16.mxu1 %v1285_v22  ;;  %v235_v17 = vld [vmem:[#allocation3 + $0x1e0] sm:$0xff]  ;;  %v236_v19 = vld [vmem:[#allocation3 + $0x1e8] sm:$0xff]  ;;  %v205_v20 = vld [vmem:[#allocation3 + $0xf0] sm:$0xff] }
  0x40   :  { %v237_v21 = vld [vmem:[#allocation3 + $0x1f0] sm:$0xff]  ;;  %v238_v23 = vld [vmem:[#allocation3 + $0x1f8] sm:$0xff]  ;;  %v1444_v24 = vld [vmem:[%s1527_s2] ss:$0 sm:$0xff]  ;;  %s1390_s2 = smov [#allocation8]  }
  0x41   :  { %s1039_s11 = sshll.u32 %s1390_s2, 4  ;;  %s1040_s11 = int_to_ptr.vmem [resolvable:$true] %s1039_s11 }
  0x42   :  { %1288 = vmatpush3.bf16.msra.mxu0 %v1285_v22  ;;  %1307 = vmatpush3.bf16.msra.mxu1 %v1285_v22  ;;  %v206_v22 = vld [vmem:[#allocation3 + $0xf8] sm:$0xff]  ;;  %s1358_s12 = scalar_lea.vmem %s1040_s11, 8192  ;;  %p1363_p3 = scmp.lt.s32.totalorder %s1040_s11, %s1040_s11 }
  0x43   :  { %1290 = vmatprep.subr.bf16.mxu0 %v1289_v25  ;;  %1300 = vmatprep.subr.bf16.mxu1 %v1289_v25  ;;  %p1359_p2 = scmp.ne.s32.totalorder %s1040_s11, %s1358_s12  ;;  %p1364_p4 = scmp.lt.s32.totalorder %s1358_s12, %s1358_s12 }
  0x45   :  { %p1365_p5 = por %p1364_p4, %p1363_p3 }
  0x46   :  { %1292 = vmatpush3.bf16.msra.mxu0 %v1289_v25  ;;  %1308 = vmatpush3.bf16.msra.mxu1 %v1289_v25 }
  0x47   :  { %p1366_p6 = pnand %p1365_p5, %p1359_p2 }
  0x49   :  { %1166 = vmatmul.mubr.f32.vlgmr.msra.gmra.mrb[0].mxu0 %v176_v26  ;;  %1214 = vmatmul.mubr.f32.vlgmr.msra.gmra.mrb[0].mxu1 %v208_v27 }
  0x4a   :  { %1168 = vmatprep.mubr.f32.mxu0 %v177_v28  ;;  %1216 = vmatprep.mubr.f32.mxu1 %v209_v29 }
  0x4d   :  { %1169 = vmatmul.mubr.f32.gmra.mrb[2].mxu0 %v178_v30  ;;  %1217 = vmatmul.mubr.f32.gmra.mrb[2].mxu1 %v210_v31 }
  0x4e   :  { %1171 = vmatprep.mubr.f32.mxu0 %v179_v32  ;;  %1219 = vmatprep.mubr.f32.mxu1 %v211_v33 }
  0x51   :  { %1172 = vmatmul.mubr.f32.gmra.mrb[4].mxu0 %v180_v34  ;;  %1220 = vmatmul.mubr.f32.gmra.mrb[4].mxu1 %v212_v35 }
  0x52   :  { %1174 = vmatprep.mubr.f32.mxu0 %v181_v36  ;;  %1222 = vmatprep.mubr.f32.mxu1 %v213_v37 }
  0x55   :  { %1175 = vmatmul.mubr.f32.gmra.mrb[6].mxu0 %v182_v38  ;;  %1223 = vmatmul.mubr.f32.gmra.mrb[6].mxu1 %v214_v39 }
  0x56   :  { %1177 = vmatprep.mubr.f32.mxu0 %v183_v40  ;;  %1225 = vmatprep.mubr.f32.mxu1 %v215_v41 }
  0x59   :  { %1178 = vmatmul.mubr.f32.gmra.mrb[8].mxu0 %v184_v42  ;;  %1226 = vmatmul.mubr.f32.gmra.mrb[8].mxu1 %v216_v43 }
  0x5a   :  { %1180 = vmatprep.mubr.f32.mxu0 %v185_v44  ;;  %1228 = vmatprep.mubr.f32.mxu1 %v217_v45 }
  0x5d   :  { %1181 = vmatmul.mubr.f32.gmra.mrb[10].mxu0 %v186_v46  ;;  %1229 = vmatmul.mubr.f32.gmra.mrb[10].mxu1 %v218_v47 }
  0x5e   :  { %1183 = vmatprep.mubr.f32.mxu0 %v187_v48  ;;  %1231 = vmatprep.mubr.f32.mxu1 %v219_v49 }
  0x61   :  { %1184 = vmatmul.mubr.f32.gmra.mrb[12].mxu0 %v188_v50  ;;  %1232 = vmatmul.mubr.f32.gmra.mrb[12].mxu1 %v220_v51 }
  0x62   :  { %1186 = vmatprep.mubr.f32.mxu0 %v189_v52  ;;  %1234 = vmatprep.mubr.f32.mxu1 %v221_v53 }
  0x65   :  { %1187 = vmatmul.mubr.f32.gmra.mrb[14].mxu0 %v190_v54  ;;  %1235 = vmatmul.mubr.f32.gmra.mrb[14].mxu1 %v222_v55 }
  0x66   :  { %1189 = vmatprep.mubr.f32.mxu0 %v191_v56  ;;  %1237 = vmatprep.mubr.f32.mxu1 %v223_v57 }
  0x69   :  { %1190 = vmatmul.mubr.f32.gmra.mrb[16].mxu0 %v192_v58  ;;  %1238 = vmatmul.mubr.f32.gmra.mrb[16].mxu1 %v224_v59 }
  0x6a   :  { %1192 = vmatprep.mubr.f32.mxu0 %v193_v60  ;;  %1240 = vmatprep.mubr.f32.mxu1 %v225_v61 }
  0x6d   :  { %1193 = vmatmul.mubr.f32.gmra.mrb[18].mxu0 %v194_v62  ;;  %1241 = vmatmul.mubr.f32.gmra.mrb[18].mxu1 %v226_v63 }
  0x6e   :  { %1195 = vmatprep.mubr.f32.mxu0 %v195_v0  ;;  %1243 = vmatprep.mubr.f32.mxu1 %v227_v1 }
  0x71   :  { %1196 = vmatmul.mubr.f32.gmra.mrb[20].mxu0 %v196_v2  ;;  %1244 = vmatmul.mubr.f32.gmra.mrb[20].mxu1 %v228_v3 }
  0x72   :  { %1198 = vmatprep.mubr.f32.mxu0 %v197_v4  ;;  %1246 = vmatprep.mubr.f32.mxu1 %v229_v5 }
  0x75   :  { %1199 = vmatmul.mubr.f32.gmra.mrb[22].mxu0 %v198_v6  ;;  %1247 = vmatmul.mubr.f32.gmra.mrb[22].mxu1 %v230_v7 }
  0x76   :  { %1201 = vmatprep.mubr.f32.mxu0 %v199_v8  ;;  %1249 = vmatprep.mubr.f32.mxu1 %v231_v9 }
  0x79   :  { %1202 = vmatmul.mubr.f32.gmra.mrb[24].mxu0 %v200_v10  ;;  %1250 = vmatmul.mubr.f32.gmra.mrb[24].mxu1 %v232_v11 }
  0x7a   :  { %1204 = vmatprep.mubr.f32.mxu0 %v201_v12  ;;  %1252 = vmatprep.mubr.f32.mxu1 %v233_v13 }
  0x7d   :  { %1205 = vmatmul.mubr.f32.gmra.mrb[26].mxu0 %v202_v14  ;;  %1253 = vmatmul.mubr.f32.gmra.mrb[26].mxu1 %v234_v15 }
  0x7e   :  { %1207 = vmatprep.mubr.f32.mxu0 %v203_v16  ;;  %1255 = vmatprep.mubr.f32.mxu1 %v235_v17 }
  0x81   :  { %1208 = vmatmul.mubr.f32.gmra.mrb[28].mxu0 %v204_v18  ;;  %1256 = vmatmul.mubr.f32.gmra.mrb[28].mxu1 %v236_v19 }
  0x82   :  { %1210 = vmatprep.mubr.f32.mxu0 %v205_v20  ;;  %1258 = vmatprep.mubr.f32.mxu1 %v237_v21 }
  0x85   :  { %1211 = vmatmul.mubr.f32.gmra.mrb[30].mxu0 %v206_v22  ;;  %1259 = vmatmul.mubr.f32.gmra.mrb[30].mxu1 %v238_v23 }
 0x11c   :  { %v1167_v25 = vpop.f32.mrb[0].mxu0  ;;  %v1215_v26 = vpop.f32.mrb[0].mxu1 }
 0x11d   :  { %v843_v27 = vadd.f32 %v1167_v25, %v1444_v24  ;;  %v875_v28 = vadd.f32 %v1215_v26, %v1444_v24  ;;  %v321_v29 = vpop.f32.mrb[1].mxu0  ;;  %v481_v30 = vpop.f32.mrb[1].mxu1 }
 0x11e   :  { %v842_v31 = vadd.f32 %v1444_v24, %v321_v29  ;;  %v874_v32 = vadd.f32 %v1444_v24, %v481_v30 }
 0x11f   :  { %v907_v33 = vmax.f32 %v843_v27, 0.0  ;;  %v939_v34 = vmax.f32 %v875_v28, 0.0 }
 0x120   :  { %v906_v35 = vmax.f32 %v842_v31, 0.0  ;;  %v938_v36 = vmax.f32 %v874_v32, 0.0  ;;  %v1170_v37 = vpop.f32.mrb[2].mxu0  ;;  %v1218_v38 = vpop.f32.mrb[2].mxu1 }
 0x121   :  { %971 = vst [vmem:[#allocation8 + $0x8] sm:$0xff] %v907_v33  ;;  %1003 = vst [vmem:[#allocation8 + $0x108] sm:$0xff] %v939_v34  ;;  %v845_v39 = vadd.f32 %v1170_v37, %v1444_v24  ;;  %v877_v40 = vadd.f32 %v1218_v38, %v1444_v24  ;;  %v331_v41 = vpop.f32.mrb[3].mxu0  ;;  %v491_v42 = vpop.f32.mrb[3].mxu1 }
 0x122   :  { %970 = vst [vmem:[#allocation8] sm:$0xff] %v906_v35  ;;  %1002 = vst [vmem:[#allocation8 + $0x100] sm:$0xff] %v938_v36  ;;  %v844_v43 = vadd.f32 %v1444_v24, %v331_v41  ;;  %v876_v44 = vadd.f32 %v1444_v24, %v491_v42 }
 0x123   :  { %v909_v45 = vmax.f32 %v845_v39, 0.0  ;;  %v941_v46 = vmax.f32 %v877_v40, 0.0 }
 0x124   :  { %v908_v47 = vmax.f32 %v844_v43, 0.0  ;;  %v940_v48 = vmax.f32 %v876_v44, 0.0  ;;  %v1173_v49 = vpop.f32.mrb[4].mxu0  ;;  %v1221_v50 = vpop.f32.mrb[4].mxu1 }
 0x125   :  { %973 = vst [vmem:[#allocation8 + $0x18] sm:$0xff] %v909_v45  ;;  %1005 = vst [vmem:[#allocation8 + $0x118] sm:$0xff] %v941_v46  ;;  %v847_v51 = vadd.f32 %v1173_v49, %v1444_v24  ;;  %v879_v52 = vadd.f32 %v1221_v50, %v1444_v24  ;;  %v341_v53 = vpop.f32.mrb[5].mxu0  ;;  %v501_v54 = vpop.f32.mrb[5].mxu1 }
 0x126   :  { %972 = vst [vmem:[#allocation8 + $0x10] sm:$0xff] %v908_v47  ;;  %1004 = vst [vmem:[#allocation8 + $0x110] sm:$0xff] %v940_v48  ;;  %v846_v55 = vadd.f32 %v1444_v24, %v341_v53  ;;  %v878_v56 = vadd.f32 %v1444_v24, %v501_v54 }
 0x127   :  { %v911_v57 = vmax.f32 %v847_v51, 0.0  ;;  %v943_v58 = vmax.f32 %v879_v52, 0.0 }
 0x128   :  { %v910_v59 = vmax.f32 %v846_v55, 0.0  ;;  %v942_v60 = vmax.f32 %v878_v56, 0.0  ;;  %v1176_v61 = vpop.f32.mrb[6].mxu0  ;;  %v1224_v62 = vpop.f32.mrb[6].mxu1 }
 0x129   :  { %975 = vst [vmem:[#allocation8 + $0x28] sm:$0xff] %v911_v57  ;;  %1007 = vst [vmem:[#allocation8 + $0x128] sm:$0xff] %v943_v58  ;;  %v849_v63 = vadd.f32 %v1176_v61, %v1444_v24  ;;  %v881_v0 = vadd.f32 %v1224_v62, %v1444_v24  ;;  %v351_v1 = vpop.f32.mrb[7].mxu0  ;;  %v511_v2 = vpop.f32.mrb[7].mxu1 }
 0x12a   :  { %974 = vst [vmem:[#allocation8 + $0x20] sm:$0xff] %v910_v59  ;;  %1006 = vst [vmem:[#allocation8 + $0x120] sm:$0xff] %v942_v60  ;;  %v848_v3 = vadd.f32 %v1444_v24, %v351_v1  ;;  %v880_v4 = vadd.f32 %v1444_v24, %v511_v2 }
 0x12b   :  { %v913_v5 = vmax.f32 %v849_v63, 0.0  ;;  %v945_v6 = vmax.f32 %v881_v0, 0.0 }
 0x12c   :  { %v912_v7 = vmax.f32 %v848_v3, 0.0  ;;  %v944_v8 = vmax.f32 %v880_v4, 0.0  ;;  %v1179_v9 = vpop.f32.mrb[8].mxu0  ;;  %v1227_v10 = vpop.f32.mrb[8].mxu1 }
 0x12d   :  { %977 = vst [vmem:[#allocation8 + $0x38] sm:$0xff] %v913_v5  ;;  %1009 = vst [vmem:[#allocation8 + $0x138] sm:$0xff] %v945_v6  ;;  %v851_v11 = vadd.f32 %v1179_v9, %v1444_v24  ;;  %v883_v12 = vadd.f32 %v1227_v10, %v1444_v24  ;;  %v361_v13 = vpop.f32.mrb[9].mxu0  ;;  %v521_v14 = vpop.f32.mrb[9].mxu1 }
 0x12e   :  { %976 = vst [vmem:[#allocation8 + $0x30] sm:$0xff] %v912_v7  ;;  %1008 = vst [vmem:[#allocation8 + $0x130] sm:$0xff] %v944_v8  ;;  %v850_v15 = vadd.f32 %v1444_v24, %v361_v13  ;;  %v882_v16 = vadd.f32 %v1444_v24, %v521_v14 }
 0x12f   :  { %v915_v17 = vmax.f32 %v851_v11, 0.0  ;;  %v947_v18 = vmax.f32 %v883_v12, 0.0 }
 0x130   :  { %v914_v19 = vmax.f32 %v850_v15, 0.0  ;;  %v946_v20 = vmax.f32 %v882_v16, 0.0  ;;  %v1182_v21 = vpop.f32.mrb[10].mxu0  ;;  %v1230_v22 = vpop.f32.mrb[10].mxu1 }
 0x131   :  { %979 = vst [vmem:[#allocation8 + $0x48] sm:$0xff] %v915_v17  ;;  %1011 = vst [vmem:[#allocation8 + $0x148] sm:$0xff] %v947_v18  ;;  %v853_v23 = vadd.f32 %v1182_v21, %v1444_v24  ;;  %v885_v25 = vadd.f32 %v1230_v22, %v1444_v24  ;;  %v371_v26 = vpop.f32.mrb[11].mxu0  ;;  %v531_v27 = vpop.f32.mrb[11].mxu1 }
 0x132   :  { %978 = vst [vmem:[#allocation8 + $0x40] sm:$0xff] %v914_v19  ;;  %1010 = vst [vmem:[#allocation8 + $0x140] sm:$0xff] %v946_v20  ;;  %v852_v28 = vadd.f32 %v1444_v24, %v371_v26  ;;  %v884_v29 = vadd.f32 %v1444_v24, %v531_v27 }
 0x133   :  { %v917_v30 = vmax.f32 %v853_v23, 0.0  ;;  %v949_v31 = vmax.f32 %v885_v25, 0.0 }
 0x134   :  { %v916_v32 = vmax.f32 %v852_v28, 0.0  ;;  %v948_v33 = vmax.f32 %v884_v29, 0.0  ;;  %v1185_v34 = vpop.f32.mrb[12].mxu0  ;;  %v1233_v35 = vpop.f32.mrb[12].mxu1 }
 0x135   :  { %981 = vst [vmem:[#allocation8 + $0x58] sm:$0xff] %v917_v30  ;;  %1013 = vst [vmem:[#allocation8 + $0x158] sm:$0xff] %v949_v31  ;;  %v855_v36 = vadd.f32 %v1185_v34, %v1444_v24  ;;  %v887_v37 = vadd.f32 %v1233_v35, %v1444_v24  ;;  %v381_v38 = vpop.f32.mrb[13].mxu0  ;;  %v541_v39 = vpop.f32.mrb[13].mxu1 }
 0x136   :  { %980 = vst [vmem:[#allocation8 + $0x50] sm:$0xff] %v916_v32  ;;  %1012 = vst [vmem:[#allocation8 + $0x150] sm:$0xff] %v948_v33  ;;  %v854_v40 = vadd.f32 %v1444_v24, %v381_v38  ;;  %v886_v41 = vadd.f32 %v1444_v24, %v541_v39 }
 0x137   :  { %v919_v42 = vmax.f32 %v855_v36, 0.0  ;;  %v951_v43 = vmax.f32 %v887_v37, 0.0 }
 0x138   :  { %v918_v44 = vmax.f32 %v854_v40, 0.0  ;;  %v950_v45 = vmax.f32 %v886_v41, 0.0  ;;  %v1188_v46 = vpop.f32.mrb[14].mxu0  ;;  %v1236_v47 = vpop.f32.mrb[14].mxu1 }
 0x139   :  { %983 = vst [vmem:[#allocation8 + $0x68] sm:$0xff] %v919_v42  ;;  %1015 = vst [vmem:[#allocation8 + $0x168] sm:$0xff] %v951_v43  ;;  %v857_v48 = vadd.f32 %v1188_v46, %v1444_v24  ;;  %v889_v49 = vadd.f32 %v1236_v47, %v1444_v24  ;;  %v391_v50 = vpop.f32.mrb[15].mxu0  ;;  %v551_v51 = vpop.f32.mrb[15].mxu1 }
 0x13a   :  { %982 = vst [vmem:[#allocation8 + $0x60] sm:$0xff] %v918_v44  ;;  %1014 = vst [vmem:[#allocation8 + $0x160] sm:$0xff] %v950_v45  ;;  %v856_v52 = vadd.f32 %v1444_v24, %v391_v50  ;;  %v888_v53 = vadd.f32 %v1444_v24, %v551_v51 }
 0x13b   :  { %v921_v54 = vmax.f32 %v857_v48, 0.0  ;;  %v953_v55 = vmax.f32 %v889_v49, 0.0 }
 0x13c   :  { %v920_v56 = vmax.f32 %v856_v52, 0.0  ;;  %v952_v57 = vmax.f32 %v888_v53, 0.0  ;;  %v1191_v58 = vpop.f32.mrb[16].mxu0  ;;  %v1239_v59 = vpop.f32.mrb[16].mxu1 }
 0x13d   :  { %985 = vst [vmem:[#allocation8 + $0x78] sm:$0xff] %v921_v54  ;;  %1017 = vst [vmem:[#allocation8 + $0x178] sm:$0xff] %v953_v55  ;;  %v859_v60 = vadd.f32 %v1191_v58, %v1444_v24  ;;  %v891_v61 = vadd.f32 %v1239_v59, %v1444_v24  ;;  %v401_v62 = vpop.f32.mrb[17].mxu0  ;;  %v561_v63 = vpop.f32.mrb[17].mxu1 }
 0x13e   :  { %984 = vst [vmem:[#allocation8 + $0x70] sm:$0xff] %v920_v56  ;;  %1016 = vst [vmem:[#allocation8 + $0x170] sm:$0xff] %v952_v57  ;;  %v858_v0 = vadd.f32 %v1444_v24, %v401_v62  ;;  %v890_v1 = vadd.f32 %v1444_v24, %v561_v63 }
 0x13f   :  { %v923_v2 = vmax.f32 %v859_v60, 0.0  ;;  %v955_v3 = vmax.f32 %v891_v61, 0.0 }
 0x140   :  { %v922_v4 = vmax.f32 %v858_v0, 0.0  ;;  %v954_v5 = vmax.f32 %v890_v1, 0.0  ;;  %v1194_v6 = vpop.f32.mrb[18].mxu0  ;;  %v1242_v7 = vpop.f32.mrb[18].mxu1 }
 0x141   :  { %987 = vst [vmem:[#allocation8 + $0x88] sm:$0xff] %v923_v2  ;;  %1019 = vst [vmem:[#allocation8 + $0x188] sm:$0xff] %v955_v3  ;;  %v861_v8 = vadd.f32 %v1194_v6, %v1444_v24  ;;  %v893_v9 = vadd.f32 %v1242_v7, %v1444_v24  ;;  %v411_v10 = vpop.f32.mrb[19].mxu0  ;;  %v571_v11 = vpop.f32.mrb[19].mxu1 }
 0x142   :  { %986 = vst [vmem:[#allocation8 + $0x80] sm:$0xff] %v922_v4  ;;  %1018 = vst [vmem:[#allocation8 + $0x180] sm:$0xff] %v954_v5  ;;  %v860_v12 = vadd.f32 %v1444_v24, %v411_v10  ;;  %v892_v13 = vadd.f32 %v1444_v24, %v571_v11 }
 0x143   :  { %v925_v14 = vmax.f32 %v861_v8, 0.0  ;;  %v957_v15 = vmax.f32 %v893_v9, 0.0 }
 0x144   :  { %v924_v16 = vmax.f32 %v860_v12, 0.0  ;;  %v956_v17 = vmax.f32 %v892_v13, 0.0  ;;  %v1197_v18 = vpop.f32.mrb[20].mxu0  ;;  %v1245_v19 = vpop.f32.mrb[20].mxu1 }
 0x145   :  { %989 = vst [vmem:[#allocation8 + $0x98] sm:$0xff] %v925_v14  ;;  %1021 = vst [vmem:[#allocation8 + $0x198] sm:$0xff] %v957_v15  ;;  %v863_v20 = vadd.f32 %v1197_v18, %v1444_v24  ;;  %v895_v21 = vadd.f32 %v1245_v19, %v1444_v24  ;;  %v421_v22 = vpop.f32.mrb[21].mxu0  ;;  %v581_v23 = vpop.f32.mrb[21].mxu1 }
 0x146   :  { %988 = vst [vmem:[#allocation8 + $0x90] sm:$0xff] %v924_v16  ;;  %1020 = vst [vmem:[#allocation8 + $0x190] sm:$0xff] %v956_v17  ;;  %v862_v25 = vadd.f32 %v1444_v24, %v421_v22  ;;  %v894_v26 = vadd.f32 %v1444_v24, %v581_v23 }
 0x147   :  { %v927_v27 = vmax.f32 %v863_v20, 0.0  ;;  %v959_v28 = vmax.f32 %v895_v21, 0.0 }
 0x148   :  { %v926_v29 = vmax.f32 %v862_v25, 0.0  ;;  %v958_v30 = vmax.f32 %v894_v26, 0.0  ;;  %v1200_v31 = vpop.f32.mrb[22].mxu0  ;;  %v1248_v32 = vpop.f32.mrb[22].mxu1 }
 0x149   :  { %991 = vst [vmem:[#allocation8 + $0xa8] sm:$0xff] %v927_v27  ;;  %1023 = vst [vmem:[#allocation8 + $0x1a8] sm:$0xff] %v959_v28  ;;  %v865_v33 = vadd.f32 %v1200_v31, %v1444_v24  ;;  %v897_v34 = vadd.f32 %v1248_v32, %v1444_v24  ;;  %v431_v35 = vpop.f32.mrb[23].mxu0  ;;  %v591_v36 = vpop.f32.mrb[23].mxu1 }
 0x14a   :  { %990 = vst [vmem:[#allocation8 + $0xa0] sm:$0xff] %v926_v29  ;;  %1022 = vst [vmem:[#allocation8 + $0x1a0] sm:$0xff] %v958_v30  ;;  %v864_v37 = vadd.f32 %v1444_v24, %v431_v35  ;;  %v896_v38 = vadd.f32 %v1444_v24, %v591_v36 }
 0x14b   :  { %v929_v39 = vmax.f32 %v865_v33, 0.0  ;;  %v961_v40 = vmax.f32 %v897_v34, 0.0 }
 0x14c   :  { %v928_v41 = vmax.f32 %v864_v37, 0.0  ;;  %v960_v42 = vmax.f32 %v896_v38, 0.0  ;;  %v1203_v43 = vpop.f32.mrb[24].mxu0  ;;  %v1251_v44 = vpop.f32.mrb[24].mxu1 }
 0x14d   :  { %993 = vst [vmem:[#allocation8 + $0xb8] sm:$0xff] %v929_v39  ;;  %1025 = vst [vmem:[#allocation8 + $0x1b8] sm:$0xff] %v961_v40  ;;  %v867_v45 = vadd.f32 %v1203_v43, %v1444_v24  ;;  %v899_v46 = vadd.f32 %v1251_v44, %v1444_v24  ;;  %v441_v47 = vpop.f32.mrb[25].mxu0  ;;  %v601_v48 = vpop.f32.mrb[25].mxu1 }
 0x14e   :  { %992 = vst [vmem:[#allocation8 + $0xb0] sm:$0xff] %v928_v41  ;;  %1024 = vst [vmem:[#allocation8 + $0x1b0] sm:$0xff] %v960_v42  ;;  %v866_v49 = vadd.f32 %v1444_v24, %v441_v47  ;;  %v898_v50 = vadd.f32 %v1444_v24, %v601_v48 }
 0x14f   :  { %v931_v51 = vmax.f32 %v867_v45, 0.0  ;;  %v963_v52 = vmax.f32 %v899_v46, 0.0 }
 0x150   :  { %v930_v53 = vmax.f32 %v866_v49, 0.0  ;;  %v962_v54 = vmax.f32 %v898_v50, 0.0  ;;  %v1206_v55 = vpop.f32.mrb[26].mxu0  ;;  %v1254_v56 = vpop.f32.mrb[26].mxu1 }
 0x151   :  { %995 = vst [vmem:[#allocation8 + $0xc8] sm:$0xff] %v931_v51  ;;  %1027 = vst [vmem:[#allocation8 + $0x1c8] sm:$0xff] %v963_v52  ;;  %v869_v57 = vadd.f32 %v1206_v55, %v1444_v24  ;;  %v901_v58 = vadd.f32 %v1254_v56, %v1444_v24  ;;  %v451_v59 = vpop.f32.mrb[27].mxu0  ;;  %v611_v60 = vpop.f32.mrb[27].mxu1 }
 0x152   :  { %994 = vst [vmem:[#allocation8 + $0xc0] sm:$0xff] %v930_v53  ;;  %1026 = vst [vmem:[#allocation8 + $0x1c0] sm:$0xff] %v962_v54  ;;  %v868_v61 = vadd.f32 %v1444_v24, %v451_v59  ;;  %v900_v62 = vadd.f32 %v1444_v24, %v611_v60 }
 0x153   :  { %v933_v63 = vmax.f32 %v869_v57, 0.0  ;;  %v965_v0 = vmax.f32 %v901_v58, 0.0 }
 0x154   :  { %v932_v1 = vmax.f32 %v868_v61, 0.0  ;;  %v964_v2 = vmax.f32 %v900_v62, 0.0  ;;  %v1209_v3 = vpop.f32.mrb[28].mxu0  ;;  %v1257_v4 = vpop.f32.mrb[28].mxu1 }
 0x155   :  { %997 = vst [vmem:[#allocation8 + $0xd8] sm:$0xff] %v933_v63  ;;  %1029 = vst [vmem:[#allocation8 + $0x1d8] sm:$0xff] %v965_v0  ;;  %v871_v5 = vadd.f32 %v1209_v3, %v1444_v24  ;;  %v903_v6 = vadd.f32 %v1257_v4, %v1444_v24  ;;  %v461_v7 = vpop.f32.mrb[29].mxu0  ;;  %v621_v8 = vpop.f32.mrb[29].mxu1 }
 0x156   :  { %996 = vst [vmem:[#allocation8 + $0xd0] sm:$0xff] %v932_v1  ;;  %1028 = vst [vmem:[#allocation8 + $0x1d0] sm:$0xff] %v964_v2  ;;  %v870_v9 = vadd.f32 %v1444_v24, %v461_v7  ;;  %v902_v10 = vadd.f32 %v1444_v24, %v621_v8 }
 0x157   :  { %v935_v11 = vmax.f32 %v871_v5, 0.0  ;;  %v967_v12 = vmax.f32 %v903_v6, 0.0 }
 0x158   :  { %v934_v13 = vmax.f32 %v870_v9, 0.0  ;;  %v966_v14 = vmax.f32 %v902_v10, 0.0  ;;  %v1212_v15 = vpop.f32.mrb[30].mxu0  ;;  %v1260_v16 = vpop.f32.mrb[30].mxu1 }
 0x159   :  { %999 = vst [vmem:[#allocation8 + $0xe8] sm:$0xff] %v935_v11  ;;  %1031 = vst [vmem:[#allocation8 + $0x1e8] sm:$0xff] %v967_v12  ;;  %v873_v17 = vadd.f32 %v1212_v15, %v1444_v24  ;;  %v905_v18 = vadd.f32 %v1260_v16, %v1444_v24  ;;  %v471_v19 = vpop.f32.mrb[31].mxu0  ;;  %v631_v20 = vpop.f32.mrb[31].mxu1 }
 0x15a   :  { %998 = vst [vmem:[#allocation8 + $0xe0] sm:$0xff] %v934_v13  ;;  %1030 = vst [vmem:[#allocation8 + $0x1e0] sm:$0xff] %v966_v14  ;;  %v872_v21 = vadd.f32 %v1444_v24, %v471_v19  ;;  %v904_v22 = vadd.f32 %v1444_v24, %v631_v20 }
 0x15b   :  { %v937_v23 = vmax.f32 %v873_v17, 0.0  ;;  %v969_v25 = vmax.f32 %v905_v18, 0.0 }
 0x15c   :  { %v936_v26 = vmax.f32 %v872_v21, 0.0  ;;  %v968_v27 = vmax.f32 %v904_v22, 0.0 }
 0x15d   :  { %1001 = vst [vmem:[#allocation8 + $0xf8] sm:$0xff] %v937_v23  ;;  %1033 = vst [vmem:[#allocation8 + $0x1f8] sm:$0xff] %v969_v25 }
 0x15e   :  { %1000 = vst [vmem:[#allocation8 + $0xf0] sm:$0xff] %v936_v26  ;;  %1032 = vst [vmem:[#allocation8 + $0x1f0] sm:$0xff] %v968_v27 }
 0x15f   :  { %1369 = shalt.err (!%p1366_p6)
}
 0x160   :  { %s1370_s15 = scalar_lea.hbm %s1528_s3, 8192 }
 0x161   :  { %p1371_p7 = scmp.ne.s32.totalorder %s1528_s3, %s1370_s15  ;;  %p1374_p8 = scmp.lt.u32.totalorder %s1370_s15, %s1528_s3 }
 0x163   :  { %p1376_p9 = pnand %p1374_p8, %p1371_p7 }
 0x165   :  { %1379 = shalt.err (!%p1376_p9)
}
 0x166   :  { %1045 = dma.vmem_to_hbm [thread:$0]  %s1040_s11, 8192, %s1528_s3, [#allocation5], %s1387_s22, %s1387_s22, %s1388_s23  }
 0x167   :  { %1384 = dma.done.wait [#allocation5], 8192  }
 0x168   :  { %1385 = vsyncadd [#allocation5], 4294959104 }
 0x169   :  { %1049 = vsyncpa [#allocation4], 1 }
 0x16a   :  { %1050 = vsyncpa [#allocation7], 1 }
 0x16b   :  { %1051 = vsyncpa [#allocation5], 1 }

</bundles_post_ra>
